<compile_context>
chip_gen: v7x
topology: tpu7x:2x2x1
jax: 0.10.0
libtpu: 0.0.40
codegen_flags: <defaults>
</compile_context>

<pallas_src>
import jax
import jax.numpy as jnp
from jax.experimental import pallas as pl
from jax.experimental.pallas import tpu as pltpu


def rnn_kernel(x_ref, wih_ref, whh_ref, wfc_ref, out_ref):
    """Full forward pass of the RNN module.

    x_ref:   [seq*batch, input_size+1]   (ones column appended in the wrapper)
    wih_ref: [input_size+1, hidden]      (W_ih^T with (b_ih+b_hh) as last row)
    whh_ref: [hidden, hidden]            (W_hh^T)
    wfc_ref: [hidden+1, output]          (W_fc^T with b_fc as last row)
    out_ref: [batch, output]
    """
    rows = x_ref.shape[0]
    hidden = whh_ref.shape[0]
    batch = out_ref.shape[0]
    seq = rows // batch

    # Hoisted input projection for all timesteps with both RNNCell biases
    # folded in:  [seq*batch, in+1] @ [in+1, hidden]  ->  [seq*batch, hidden].
    xw = jnp.dot(x_ref[...], wih_ref[...], preferred_element_type=jnp.float32)

    w_hh = whh_ref[...]

    # Recurrent loop, fully unrolled; h lives entirely in vregs.  Per step:
    # one MXU matmul + one VALU add + one EUP tanh on the serial chain.
    h = jnp.zeros((batch, hidden), jnp.float32)
    for t in range(seq):
        xw_t = xw[t * batch:(t + 1) * batch, :]
        h = jnp.tanh(xw_t + jnp.dot(h, w_hh, preferred_element_type=jnp.float32))

    # fc (bias folded as the last row of wfc_ref) + LogSoftmax(dim=1).
    logits = (jnp.dot(h, wfc_ref[0:hidden, :], preferred_element_type=jnp.float32)
              + wfc_ref[hidden:hidden + 1, :])
    m = jnp.max(logits, axis=1, keepdims=True)
    shifted = logits - m
    lse = jnp.log(jnp.sum(jnp.exp(shifted), axis=1, keepdims=True))
    out_ref[...] = (shifted - lse).astype(out_ref.dtype)


@jax.jit
def rnn_forward(x, w_ih, w_hh, b_ih, b_hh, w_fc, b_fc):
    seq, batch, input_size = x.shape
    hidden = w_hh.shape[0]
    output_size = w_fc.shape[0]

    # All layout plumbing happens here (free in XLA-land, keeps the kernel
    # prologue free of relayouts):
    #   * flatten x to [seq*batch, in] and append a ones column,
    #   * transpose weights and append the fused bias rows.
    x2 = x.reshape(seq * batch, input_size).astype(jnp.float32)
    x_aug = jnp.concatenate(
        [x2, jnp.ones((seq * batch, 1), jnp.float32)], axis=1)            # [S*B, in+1]
    wih_aug = jnp.concatenate(
        [w_ih.T, (b_ih + b_hh).reshape(1, hidden)], axis=0)               # [in+1, hidden]
    w_hh_t = w_hh.T                                                       # [hidden, hidden]
    wfc_aug = jnp.concatenate(
        [w_fc.T, b_fc.reshape(1, output_size)], axis=0)                   # [hidden+1, out]

    vmem = pl.BlockSpec(memory_space=pltpu.MemorySpace.VMEM)
    return pl.pallas_call(
        rnn_kernel,
        out_shape=jax.ShapeDtypeStruct((batch, output_size), jnp.float32),
        in_specs=[vmem] * 4,
        out_specs=vmem,
    )(x_aug, wih_aug, w_hh_t, wfc_aug)


def _reference(x, w_ih, w_hh, b_ih, b_hh, w_fc, b_fc):
    """Pure-JAX reference matching the PyTorch forward."""
    seq, batch, _ = x.shape
    hidden = w_hh.shape[0]
    h = jnp.zeros((batch, hidden), jnp.float32)
    for i in range(seq):
        h = jnp.tanh(x[i] @ w_ih.T + b_ih + h @ w_hh.T + b_hh)
    logits = h @ w_fc.T + b_fc
    return jax.nn.log_softmax(logits, axis=1)


if __name__ == "__main__":
    # Small shapes consistent with the module's forward signature
    # (x: [seq_length, 1, input_size]).
    seq_length, batch, input_size = 8, 1, 16
    hidden_size, output_size = 32, 8

    key = jax.random.PRNGKey(0)
    ks = jax.random.split(key, 7)
    bound = 1.0 / jnp.sqrt(hidden_size)

    x = jax.random.normal(ks[0], (seq_length, batch, input_size), jnp.float32)
    w_ih = jax.random.uniform(ks[1], (hidden_size, input_size), jnp.float32, -bound, bound)
    w_hh = jax.random.uniform(ks[2], (hidden_size, hidden_size), jnp.float32, -bound, bound)
    b_ih = jax.random.uniform(ks[3], (hidden_size,), jnp.float32, -bound, bound)
    b_hh = jax.random.uniform(ks[4], (hidden_size,), jnp.float32, -bound, bound)
    w_fc = jax.random.uniform(ks[5], (output_size, hidden_size), jnp.float32, -bound, bound)
    b_fc = jax.random.uniform(ks[6], (output_size,), jnp.float32, -bound, bound)

    out = rnn_forward(x, w_ih, w_hh, b_ih, b_hh, w_fc, b_fc)
    out = jax.block_until_ready(out)

    ref = _reference(x, w_ih, w_hh, b_ih, b_hh, w_fc, b_fc)
    assert out.shape == (batch, output_size)
    assert jnp.allclose(out, ref, atol=1e-5, rtol=1e-5), (out, ref)

    print("KERNEL_OK")
</pallas_src>

<mosaic_0001>
module attributes {stable_mosaic.version = 11 : i64} {
  func.func @rnn_kernel(%arg0: memref<8x17xf32, #tpu.memory_space<vmem>>, %arg1: memref<17x32xf32, #tpu.memory_space<vmem>>, %arg2: memref<32x32xf32, #tpu.memory_space<vmem>>, %arg3: memref<33x8xf32, #tpu.memory_space<vmem>>, %arg4: memref<1x8xf32, #tpu.memory_space<vmem>>) attributes {dimension_semantics = [], scalar_prefetch = 0 : i64, scratch_operands = 0 : i64, tpu.core_type = #tpu.core_type<tc>} {
    %c0 = arith.constant 0 : index
    %c0_0 = arith.constant 0 : index
    %0 = vector.load %arg0[%c0, %c0_0] : memref<8x17xf32, #tpu.memory_space<vmem>>, vector<8x17xf32>
    %c0_1 = arith.constant 0 : index
    %c0_2 = arith.constant 0 : index
    %1 = vector.load %arg1[%c0_1, %c0_2] : memref<17x32xf32, #tpu.memory_space<vmem>>, vector<17x32xf32>
    %cst = arith.constant dense<0.000000e+00> : vector<8x32xf32>
    %2 = tpu.matmul %0, %1, %cst {dimension_numbers = #tpu.dot_dimension_numbers<[1], [0], [0], [1], [0, 0, 1, 1], [], []>} : vector<8x17xf32>, vector<17x32xf32>, vector<8x32xf32> -> vector<8x32xf32>
    %c0_3 = arith.constant 0 : index
    %c0_4 = arith.constant 0 : index
    %3 = vector.load %arg2[%c0_3, %c0_4] : memref<32x32xf32, #tpu.memory_space<vmem>>, vector<32x32xf32>
    %cst_5 = arith.constant 0.000000e+00 : f32
    %4 = vector.broadcast %cst_5 : f32 to vector<1x32xf32>
    %5 = vector.extract_strided_slice %2 {offsets = [0, 0], sizes = [1, 32], strides = [1, 1]} : vector<8x32xf32> to vector<1x32xf32>
    %cst_6 = arith.constant dense<0.000000e+00> : vector<1x32xf32>
    %6 = tpu.matmul %4, %3, %cst_6 {dimension_numbers = #tpu.dot_dimension_numbers<[1], [0], [0], [1], [0, 0, 1, 1], [], []>} : vector<1x32xf32>, vector<32x32xf32>, vector<1x32xf32> -> vector<1x32xf32>
    %7 = arith.addf %5, %6 : vector<1x32xf32>
    %8 = math.tanh %7 : vector<1x32xf32>
    %9 = vector.extract_strided_slice %2 {offsets = [1, 0], sizes = [1, 32], strides = [1, 1]} : vector<8x32xf32> to vector<1x32xf32>
    %cst_7 = arith.constant dense<0.000000e+00> : vector<1x32xf32>
    %10 = tpu.matmul %8, %3, %cst_7 {dimension_numbers = #tpu.dot_dimension_numbers<[1], [0], [0], [1], [0, 0, 1, 1], [], []>} : vector<1x32xf32>, vector<32x32xf32>, vector<1x32xf32> -> vector<1x32xf32>
    %11 = arith.addf %9, %10 : vector<1x32xf32>
    %12 = math.tanh %11 : vector<1x32xf32>
    %13 = vector.extract_strided_slice %2 {offsets = [2, 0], sizes = [1, 32], strides = [1, 1]} : vector<8x32xf32> to vector<1x32xf32>
    %cst_8 = arith.constant dense<0.000000e+00> : vector<1x32xf32>
    %14 = tpu.matmul %12, %3, %cst_8 {dimension_numbers = #tpu.dot_dimension_numbers<[1], [0], [0], [1], [0, 0, 1, 1], [], []>} : vector<1x32xf32>, vector<32x32xf32>, vector<1x32xf32> -> vector<1x32xf32>
    %15 = arith.addf %13, %14 : vector<1x32xf32>
    %16 = math.tanh %15 : vector<1x32xf32>
    %17 = vector.extract_strided_slice %2 {offsets = [3, 0], sizes = [1, 32], strides = [1, 1]} : vector<8x32xf32> to vector<1x32xf32>
    %cst_9 = arith.constant dense<0.000000e+00> : vector<1x32xf32>
    %18 = tpu.matmul %16, %3, %cst_9 {dimension_numbers = #tpu.dot_dimension_numbers<[1], [0], [0], [1], [0, 0, 1, 1], [], []>} : vector<1x32xf32>, vector<32x32xf32>, vector<1x32xf32> -> vector<1x32xf32>
    %19 = arith.addf %17, %18 : vector<1x32xf32>
    %20 = math.tanh %19 : vector<1x32xf32>
    %21 = vector.extract_strided_slice %2 {offsets = [4, 0], sizes = [1, 32], strides = [1, 1]} : vector<8x32xf32> to vector<1x32xf32>
    %cst_10 = arith.constant dense<0.000000e+00> : vector<1x32xf32>
    %22 = tpu.matmul %20, %3, %cst_10 {dimension_numbers = #tpu.dot_dimension_numbers<[1], [0], [0], [1], [0, 0, 1, 1], [], []>} : vector<1x32xf32>, vector<32x32xf32>, vector<1x32xf32> -> vector<1x32xf32>
    %23 = arith.addf %21, %22 : vector<1x32xf32>
    %24 = math.tanh %23 : vector<1x32xf32>
    %25 = vector.extract_strided_slice %2 {offsets = [5, 0], sizes = [1, 32], strides = [1, 1]} : vector<8x32xf32> to vector<1x32xf32>
    %cst_11 = arith.constant dense<0.000000e+00> : vector<1x32xf32>
    %26 = tpu.matmul %24, %3, %cst_11 {dimension_numbers = #tpu.dot_dimension_numbers<[1], [0], [0], [1], [0, 0, 1, 1], [], []>} : vector<1x32xf32>, vector<32x32xf32>, vector<1x32xf32> -> vector<1x32xf32>
    %27 = arith.addf %25, %26 : vector<1x32xf32>
    %28 = math.tanh %27 : vector<1x32xf32>
    %29 = vector.extract_strided_slice %2 {offsets = [6, 0], sizes = [1, 32], strides = [1, 1]} : vector<8x32xf32> to vector<1x32xf32>
    %cst_12 = arith.constant dense<0.000000e+00> : vector<1x32xf32>
    %30 = tpu.matmul %28, %3, %cst_12 {dimension_numbers = #tpu.dot_dimension_numbers<[1], [0], [0], [1], [0, 0, 1, 1], [], []>} : vector<1x32xf32>, vector<32x32xf32>, vector<1x32xf32> -> vector<1x32xf32>
    %31 = arith.addf %29, %30 : vector<1x32xf32>
    %32 = math.tanh %31 : vector<1x32xf32>
    %33 = vector.extract_strided_slice %2 {offsets = [7, 0], sizes = [1, 32], strides = [1, 1]} : vector<8x32xf32> to vector<1x32xf32>
    %cst_13 = arith.constant dense<0.000000e+00> : vector<1x32xf32>
    %34 = tpu.matmul %32, %3, %cst_13 {dimension_numbers = #tpu.dot_dimension_numbers<[1], [0], [0], [1], [0, 0, 1, 1], [], []>} : vector<1x32xf32>, vector<32x32xf32>, vector<1x32xf32> -> vector<1x32xf32>
    %35 = arith.addf %33, %34 : vector<1x32xf32>
    %36 = math.tanh %35 : vector<1x32xf32>
    %c0_14 = arith.constant 0 : index
    %c0_15 = arith.constant 0 : index
    %37 = vector.load %arg3[%c0_14, %c0_15] : memref<33x8xf32, #tpu.memory_space<vmem>>, vector<32x8xf32>
    %cst_16 = arith.constant dense<0.000000e+00> : vector<1x8xf32>
    %38 = tpu.matmul %36, %37, %cst_16 {dimension_numbers = #tpu.dot_dimension_numbers<[1], [0], [0], [1], [0, 0, 1, 1], [], []>} : vector<1x32xf32>, vector<32x8xf32>, vector<1x8xf32> -> vector<1x8xf32>
    %c32 = arith.constant 32 : index
    %c0_17 = arith.constant 0 : index
    %39 = vector.load %arg3[%c32, %c0_17] : memref<33x8xf32, #tpu.memory_space<vmem>>, vector<1x8xf32>
    %40 = arith.addf %38, %39 : vector<1x8xf32>
    %cst_18 = arith.constant dense<0xFF800000> : vector<1xf32>
    %41 = vector.multi_reduction <maximumf>, %40, %cst_18 [1] : vector<1x8xf32> to vector<1xf32>
    %42 = vector.shape_cast %41 : vector<1xf32> to vector<1x1xf32>
    %43 = vector.broadcast %42 : vector<1x1xf32> to vector<1x8xf32>
    %44 = arith.subf %40, %43 : vector<1x8xf32>
    %45 = math.exp %44 : vector<1x8xf32>
    %cst_19 = arith.constant dense<0.000000e+00> : vector<1xf32>
    %46 = vector.multi_reduction <add>, %45, %cst_19 [1] : vector<1x8xf32> to vector<1xf32>
    %47 = vector.shape_cast %46 : vector<1xf32> to vector<1x1xf32>
    %48 = math.log %47 : vector<1x1xf32>
    %49 = vector.broadcast %48 : vector<1x1xf32> to vector<1x8xf32>
    %50 = arith.subf %44, %49 : vector<1x8xf32>
    %c0_20 = arith.constant 0 : index
    %c0_21 = arith.constant 0 : index
    %51 = vector.load %arg4[%c0_20, %c0_21] : memref<1x8xf32, #tpu.memory_space<vmem>>, vector<1x8xf32>
    tpu.vector_store %arg4[%c0_20, %c0_21], %50 {strides = array<i32>} : memref<1x8xf32, #tpu.memory_space<vmem>>, vector<1x8xf32>,
    return
  }
}

</mosaic_0001>

<bundles_post_ra>
// kernel: rnn_forward.1
= control target key start
LH: loop header
LB: loop body
LE: loop exit
PB: predicated region body
PF: predicated region fallthrough
CT: control target
= control target key end

     0   :  { %v1111_v3 = vmov 0.0|0.0   ;;  %vm1112_vm0 = vmmov 0   ;;  %v1113_v9 = vmov 0.0   ;;  %s1273_s0 = inlined_call_operand.vmem [shape: f32[8,17], index: 0, kind: input, shape index: {}]   ;;  %s1274_s1 = inlined_call_operand.vmem [shape: f32[17,32], index: 1, kind: input, shape index: {}]   ;;  %s1275_s2 = inlined_call_operand.vmem [shape: f32[32,32], index: 2, kind: input, shape index: {}]   ;;  %s1276_s3 = inlined_call_operand.vmem [shape: f32[33,8], index: 3, kind: input, shape index: {}]   ;;  %s1277_s4 = inlined_call_operand.hbm [shape: f32[1,8], index: 4, kind: output, shape index: {}]  }
   0x1   :  { %v100_v0 = vld [vmem:[%s1275_s2] sm:$0xff]  ;;  %v101_v1 = vld [vmem:[%s1275_s2 + $0x8] sm:$0xff]  ;;  %1009 = vmatprep.subr.bf16.mxu1 %v1111_v3  ;;  %1006 = vmatprep.subr.bf16.mxu0 %v1111_v3  ;;  %v102_v6 = vld [vmem:[%s1275_s2 + $0x10] sm:$0xff] }
   0x2   :  { %v19_v2 = vld [vmem:[%s1274_s1] sm:$0xff]  ;;  %v1151_v4 = vpack.c.bf16 %v101_v1, %v100_v0  ;;  %v20_v5 = vld [vmem:[%s1274_s1 + $0x8] sm:$0xff]  ;;  %v103_v7 = vld [vmem:[%s1275_s2 + $0x18] sm:$0xff]  ;;  %904 = vmatprep.mubr.msk.f32.mxu0 %vm1112_vm0, %v1113_v9  ;;  %915 = vmatprep.mubr.msk.f32.mxu1 %vm1112_vm0, %v1113_v9 }
   0x3   :  { %v1007_v8 = vpack.c.bf16 %v20_v5, %v19_v2 }
   0x4   :  { %9 = vsyncpa [#allocation3], 0  ;;  %1011 = vmatpush3.bf16.msra.mxu1 %v1151_v4  ;;  %v1167_v10 = vpack.c.bf16 %v103_v7, %v102_v6  ;;  %v21_v11 = vld [vmem:[%s1274_s1 + $0x10] sm:$0x1]  ;;  %vm26_vm1 = vcmask 1040384   ;;  %v18_v12 = vld [vmem:[%s1273_s0] sm:$0xff] }
   0x5   :  { %1008 = vmatpush3.bf16.msra.mxu0 %v1007_v8  ;;  %1012 = vmatprep.subr.bf16.mxu1 %v1111_v3  ;;  %vm22_vm2 = vcmask 138240   ;;  %vm104_vm3 = vcmask 261120   ;;  %v732_v55 = vld [vmem:[%s1276_s3] sm:$0xff]  ;;  %v733_v56 = vld [vmem:[%s1276_s3 + $0x8] sm:$0xff]  ;;  %v734_v58 = vld [vmem:[%s1276_s3 + $0x10] sm:$0xff]  ;;  %vm811_vm4 = vcmask 57344  }
   0x6   :  { %902 = vmatprep.subr.mxu0 %v1113_v9  ;;  %v1058_v57 = vpack.c.bf16 %v733_v56, %v732_v55  ;;  %v735_v59 = vld [vmem:[%s1276_s3 + $0x18] sm:$0xff]  ;;  %s1114_s12 = smov [#allocation2]  }
   0x7   :  { %v1061_v60 = vpack.c.bf16 %v735_v59, %v734_v58 }
   0x8   :  { %1014 = vmatpush3.bf16.msra.mxu1 %v1167_v10 }
   0x9   :  { %903 = vmatpush3.msk.msra.mxu0 %vm26_vm1, %v21_v11  ;;  %1021 = vmatprep.subr.bf16.mxu1 %v1111_v3 }
   0xa   :  { %905 = vmatmul.mubr.msk.f32.vlgmr.msra.gmra.mrb[0].mxu0 %vm22_vm2, %v18_v12  ;;  %1015 = vmatprep.subr.bf16.mxu0 %v1111_v3 }
   0xb   :  { %916 = vmatmul.mubr.f32.vlgmr.msra.gmra.mrb[0].mxu1 %v1113_v9  ;;  %1017 = vmatpush3.bf16.msra.mxu0 %v1151_v4 }
   0xc   :  { %1018 = vmatprep.subr.bf16.mxu0 %v1111_v3  ;;  %926 = vmatprep.mubr.msk.f32.mxu0 %vm1112_vm0, %v1113_v9 }
   0xd   :  { %1023 = vmatpush3.bf16.msra.mxu1 %v1151_v4  ;;  %937 = vmatprep.mubr.msk.f32.mxu1 %vm1112_vm0, %v1113_v9 }
   0xe   :  { %1024 = vmatprep.subr.bf16.mxu1 %v1111_v3 }
   0xf   :  { %1020 = vmatpush3.bf16.msra.mxu0 %v1167_v10 }
  0x10   :  { %1027 = vmatprep.subr.bf16.mxu0 %v1111_v3 }
  0x11   :  { %1026 = vmatpush3.bf16.msra.mxu1 %v1167_v10 }
  0x12   :  { %1033 = vmatprep.subr.bf16.mxu1 %v1111_v3 }
  0xdd   :  { %v1193_v13 = vpop.f32.mrb[0].mxu0 }
  0xde   :  { %v906_v14 = vpop.f32.mrb[1].mxu0  ;;  %v174_v15 = vpop.f32.mrb[0].mxu1 }
  0xdf   :  { %v178_v16 = vadd.f32 %v174_v15, %v1193_v13  ;;  %v917_v17 = vpop.f32.mrb[1].mxu1 }
  0xe1   :  { %1067 = vtanh.f32 %v178_v16 }
  0xeb   :  { %v1068_v18 = vpop.eup %1067 }
  0xec   :  { %927 = vmatmul.mubr.msk.f32.vlgmr.msra.gmra.mrb[2].mxu0 %vm104_vm3, %v1068_v18 }
  0xed   :  { %1029 = vmatpush3.bf16.msra.mxu0 %v1151_v4  ;;  %948 = vmatprep.mubr.msk.f32.mxu0 %vm1112_vm0, %v1113_v9 }
  0xee   :  { %1030 = vmatprep.subr.bf16.mxu0 %v1111_v3 }
  0xf1   :  { %1032 = vmatpush3.bf16.msra.mxu0 %v1167_v10 }
  0xf2   :  { %1039 = vmatprep.subr.bf16.mxu0 %v1111_v3 }
 0x1bf   :  { %v249_v19 = vpop.f32.mrb[2].mxu0 }
 0x1c0   :  { %v254_v20 = vrot.slane %v249_v19, 7  ;;  %v928_v21 = vpop.f32.mrb[3].mxu0 }
 0x1c2   :  { %v256_v22 = vadd.f32 %v254_v20, %v1193_v13 }
 0x1c4   :  { %1069 = vtanh.f32 %v256_v22 }
 0x1ce   :  { %v1070_v23 = vpop.eup %1069 }
 0x1cf   :  { %v259_v24 = vrot.slane %v1070_v23, 1 }
 0x1d1   :  { %938 = vmatmul.mubr.msk.f32.vlgmr.msra.gmra.mrb[2].mxu1 %vm104_vm3, %v259_v24 }
 0x1d2   :  { %1035 = vmatpush3.bf16.msra.mxu1 %v1151_v4  ;;  %959 = vmatprep.mubr.msk.f32.mxu1 %vm1112_vm0, %v1113_v9 }
 0x1d3   :  { %1036 = vmatprep.subr.bf16.mxu1 %v1111_v3 }
 0x1d6   :  { %1038 = vmatpush3.bf16.msra.mxu1 %v1167_v10 }
 0x1d7   :  { %1045 = vmatprep.subr.bf16.mxu1 %v1111_v3 }
 0x2a4   :  { %v328_v25 = vpop.f32.mrb[2].mxu1 }
 0x2a5   :  { %v333_v26 = vrot.slane %v328_v25, 6  ;;  %v939_v27 = vpop.f32.mrb[3].mxu1 }
 0x2a7   :  { %v335_v28 = vadd.f32 %v333_v26, %v1193_v13 }
 0x2a9   :  { %1071 = vtanh.f32 %v335_v28 }
 0x2b3   :  { %v1072_v29 = vpop.eup %1071 }
 0x2b4   :  { %v338_v30 = vrot.slane %v1072_v29, 2 }
 0x2b6   :  { %949 = vmatmul.mubr.msk.f32.vlgmr.msra.gmra.mrb[4].mxu0 %vm104_vm3, %v338_v30 }
 0x2b7   :  { %1041 = vmatpush3.bf16.msra.mxu0 %v1151_v4  ;;  %970 = vmatprep.mubr.msk.f32.mxu0 %vm1112_vm0, %v1113_v9 }
 0x2b8   :  { %1042 = vmatprep.subr.bf16.mxu0 %v1111_v3 }
 0x2bb   :  { %1044 = vmatpush3.bf16.msra.mxu0 %v1167_v10 }
 0x2bc   :  { %1051 = vmatprep.subr.bf16.mxu0 %v1111_v3 }
 0x389   :  { %v407_v31 = vpop.f32.mrb[4].mxu0 }
 0x38a   :  { %v412_v32 = vrot.slane %v407_v31, 5  ;;  %v950_v33 = vpop.f32.mrb[5].mxu0 }
 0x38c   :  { %v414_v34 = vadd.f32 %v412_v32, %v1193_v13 }
 0x38e   :  { %1073 = vtanh.f32 %v414_v34 }
 0x398   :  { %v1074_v35 = vpop.eup %1073 }
 0x399   :  { %v417_v36 = vrot.slane %v1074_v35, 3 }
 0x39b   :  { %960 = vmatmul.mubr.msk.f32.vlgmr.msra.gmra.mrb[4].mxu1 %vm104_vm3, %v417_v36 }
 0x39c   :  { %1047 = vmatpush3.bf16.msra.mxu1 %v1151_v4  ;;  %981 = vmatprep.mubr.msk.f32.mxu1 %vm1112_vm0, %v1113_v9 }
 0x39d   :  { %1048 = vmatprep.subr.bf16.mxu1 %v1111_v3 }
 0x3a0   :  { %1050 = vmatpush3.bf16.msra.mxu1 %v1167_v10 }
 0x3a1   :  { %1057 = vmatprep.subr.bf16.mxu1 %v1111_v3 }
 0x46e   :  { %v486_v37 = vpop.f32.mrb[4].mxu1 }
 0x46f   :  { %v491_v38 = vrot.slane %v486_v37, 4  ;;  %v961_v39 = vpop.f32.mrb[5].mxu1 }
 0x471   :  { %v493_v40 = vadd.f32 %v491_v38, %v1193_v13 }
 0x473   :  { %1075 = vtanh.f32 %v493_v40 }
 0x47d   :  { %v1076_v41 = vpop.eup %1075 }
 0x47e   :  { %v496_v42 = vrot.slane %v1076_v41, 4 }
 0x480   :  { %971 = vmatmul.mubr.msk.f32.vlgmr.msra.gmra.mrb[6].mxu0 %vm104_vm3, %v496_v42 }
 0x481   :  { %1053 = vmatpush3.bf16.msra.mxu0 %v1151_v4  ;;  %992 = vmatprep.mubr.msk.f32.mxu0 %vm1112_vm0, %v1113_v9 }
 0x482   :  { %1054 = vmatprep.subr.bf16.mxu0 %v1111_v3 }
 0x485   :  { %1056 = vmatpush3.bf16.msra.mxu0 %v1167_v10 }
 0x553   :  { %v565_v43 = vpop.f32.mrb[6].mxu0 }
 0x554   :  { %v570_v44 = vrot.slane %v565_v43, 3  ;;  %v972_v45 = vpop.f32.mrb[7].mxu0 }
 0x556   :  { %v572_v46 = vadd.f32 %v570_v44, %v1193_v13 }
 0x558   :  { %1077 = vtanh.f32 %v572_v46 }
 0x562   :  { %v1078_v47 = vpop.eup %1077 }
 0x563   :  { %v575_v48 = vrot.slane %v1078_v47, 5 }
 0x565   :  { %982 = vmatmul.mubr.msk.f32.vlgmr.msra.gmra.mrb[6].mxu1 %vm104_vm3, %v575_v48 }
 0x566   :  { %1003 = vmatprep.mubr.msk.f32.mxu1 %vm1112_vm0, %v1113_v9  ;;  %1059 = vmatpush3.bf16.msra.mxu1 %v1058_v57 }
 0x567   :  { %1060 = vmatprep.subr.bf16.mxu1 %v1111_v3  ;;  %v736_v3 = vld [vmem:[%s1276_s3 + $0x20] sm:$0x1]  ;;  %s831_s3 = sshll.u32 %s1114_s12, 4  ;;  %s832_s3 = int_to_ptr.vmem [resolvable:$true] %s831_s3 }
 0x568   :  { %s1087_s13 = scalar_lea.vmem %s832_s3, 16  ;;  %s1091_s14 = scalar_lea.vmem %s832_s3, 32 }
 0x569   :  { %p1088_p0 = scmp.ne.s32.totalorder %s832_s3, %s1087_s13  ;;  %p1092_p1 = scmp.lt.s32.totalorder %s832_s3, %s832_s3 }
 0x56a   :  { %1062 = vmatpush3.bf16.msra.mxu1 %v1061_v60  ;;  %p1093_p2 = scmp.lt.s32.totalorder %s1091_s14, %s1087_s13 }
 0x56c   :  { %p1094_p3 = por %p1093_p2, %p1092_p1 }
 0x56e   :  { %p1095_p4 = pnand %p1094_p3, %p1088_p0 }
 0x638   :  { %v644_v49 = vpop.f32.mrb[6].mxu1 }
 0x639   :  { %v649_v50 = vrot.slane %v644_v49, 2  ;;  %v983_v51 = vpop.f32.mrb[7].mxu1 }
 0x63b   :  { %v651_v52 = vadd.f32 %v649_v50, %v1193_v13 }
 0x63d   :  { %1079 = vtanh.f32 %v651_v52 }
 0x647   :  { %v1080_v53 = vpop.eup %1079 }
 0x648   :  { %v654_v54 = vrot.slane %v1080_v53, 6 }
 0x64a   :  { %993 = vmatmul.mubr.msk.f32.vlgmr.msra.gmra.mrb[8].mxu0 %vm104_vm3, %v654_v54 }
 0x71d   :  { %v723_v61 = vpop.f32.mrb[8].mxu0 }
 0x71e   :  { %v728_v62 = vrot.slane %v723_v61, 1  ;;  %v994_v63 = vpop.f32.mrb[9].mxu0 }
 0x720   :  { %v730_v0 = vadd.f32 %v728_v62, %v1193_v13 }
 0x722   :  { %1081 = vtanh.f32 %v730_v0 }
 0x72c   :  { %v1082_v1 = vpop.eup %1081 }
 0x72d   :  { %v738_v2 = vrot.slane %v1082_v1, 7 }
 0x72f   :  { %1004 = vmatmul.mubr.msk.f32.vlgmr.msra.gmra.mrb[8].mxu1 %vm104_vm3, %v738_v2 }
 0x802   :  { %v807_v4 = vpop.f32.mrb[8].mxu1 }
 0x803   :  { %v808_v5 = vadd.f32 %v807_v4, %v736_v3  ;;  %v1005_v6 = vpop.f32.mrb[9].mxu1 }
 0x805   :  { %v812_v7 = vsel %vm811_vm4, %v808_v5, -inf }
 0x806   :  { %813 = vmax.xlane.f32.xlu0 %v812_v7 }
 0x893   :  { %v814_v8 = vpop.xlane.xlu0 %813 }
 0x894   :  { %v815_v9 = vsub.f32 %v808_v5, %v814_v8 }
 0x896   :  { %v816_v10 = vmul.f32 1.442695, %v815_v9 }
 0x898   :  { %1083 = vpow2.f32 %v816_v10 }
 0x8a2   :  { %v1084_v11 = vpop.eup %1083 }
 0x8a3   :  { %v818_v12 = vsel %vm811_vm4, %v1084_v11, 0.0 }
 0x8a4   :  { %819 = vadd.xlane.f32.xlu0 %v818_v12 }
 0x931   :  { %v820_v13 = vpop.xlane.xlu0 %819 }
 0x932   :  { %1085 = vlog2.f32 %v820_v13 }
 0x93c   :  { %v1086_v14 = vpop.eup %1085 }
 0x93d   :  { %v822_v15 = vmul.f32 0.6931472, %v1086_v14 }
 0x93f   :  { %v823_v16 = vsub.f32 %v815_v9, %v822_v15 }
 0x941   :  { %824 = vst.msk [vmem:[#allocation2] sm:$0x1] %vm811_vm4, %v823_v16 }
 0x942   :  { %1098 = shalt.err (!%p1095_p4)
}
 0x943   :  { %s1099_s17 = scalar_lea.hbm %s1277_s4, 16 }
 0x944   :  { %p1100_p5 = scmp.ne.s32.totalorder %s1277_s4, %s1099_s17  ;;  %p1103_p6 = scmp.lt.u32.totalorder %s1099_s17, %s1277_s4 }
 0x946   :  { %p1105_p7 = pnand %p1103_p6, %p1100_p5 }
 0x948   :  { %1108 = shalt.err (!%p1105_p7)
}
 0x949   :  { %834 = dma.vmem_to_hbm [thread:$0]  %s832_s3, 16, %s1277_s4, [#allocation3]  }
 0x94a   :  { %1109 = dma.done.wait [#allocation3], 16  }
 0x94b   :  { %1110 = vsyncadd [#allocation3], 4294967280 }
 0x94c   :  { %838 = vsyncpa [#allocation3], 1 }

</bundles_post_ra>
